<compile_context>
chip_gen: v5e
topology: v5e:2x2
jax: 0.10.0
libtpu: 0.0.40
codegen_flags: <defaults>
</compile_context>

<pallas_src>
import jax
import jax.numpy as jnp
from jax.experimental import pallas as pl
from jax.experimental.pallas import tpu as pltpu


def _round_up(a, b):
    return (a + b - 1) // b * b


def _vmem_capacity_bytes():
    """Physical per-core VMEM, with a conservative fallback (v7x = 64 MiB)."""
    try:
        info = pltpu.get_tpu_info()
        for attr in ("vmem_capacity_bytes", "vmem_bytes", "vmem_size_bytes"):
            v = getattr(info, attr, None)
            if v:
                return int(v)
    except Exception:
        pass
    return 64 << 20


def _convt_matmul_kernel(w_ref, x_ref, o_ref, acc_ref):
    """Accumulating (tm, kt) x (kt, nt) matmul; reduction is the last grid axis."""
    @pl.when(pl.program_id(2) == 0)
    def _():
        acc_ref[...] = jnp.zeros_like(acc_ref)

    acc_ref[...] += jnp.dot(w_ref[...], x_ref[...],
                            preferred_element_type=jnp.float32)

    @pl.when(pl.program_id(2) == pl.num_programs(2) - 1)
    def _():
        o_ref[...] = acc_ref[...].astype(o_ref.dtype)


def conv_transpose2d_pallas(x, W, stride, padding, compute_dtype=jnp.bfloat16):
    """ConvTranspose2d, bias=False.  x: (N, Cin, H, W), W: (Cin, Cout, K, K).

    Sub-pixel decomposition: with K padded to K_eff = ceil(K/s)*s and
    ky = qy*s + uy, the full (padding=0) output at oy = jy*s + uy is
        sum_{ci,qy,qx} x[n,ci,jy-qy,jx-qx] * W[ci,co,qy*s+uy,qx*s+ux],
    i.e. a stride-1 conv of x with a (Kq x Kq) sub-kernel per phase (uy,ux).
    All phases share one compact im2col of x, so a single matmul with
    M = s*s*Cout produces every phase; a reshape/transpose interleaves the
    phases back to NCHW and the conv-transpose padding is cropped off.
    """
    N, Cin, H, Wi = x.shape
    Cin_w, Cout, K, _ = W.shape
    assert Cin_w == Cin
    s, p = int(stride), int(padding)
    OH = (H - 1) * s - 2 * p + K
    OW = (Wi - 1) * s - 2 * p + K

    # --- phase-decomposed weights:
    # Wmat[(uy*s+ux)*Cout+co, (a*Kq+b)*Cin+ci] = W[ci,co,(Kq-1-a)*s+uy,(Kq-1-b)*s+ux]
    Kq = -(-K // s)                       # ceil(K / s)
    K_eff = Kq * s
    Wc = W.astype(compute_dtype)          # cast first: tiny array, bf16 matmul input
    if K_eff != K:                        # zero-pad taps ky >= K (no-op weights)
        Wc = jnp.pad(Wc, ((0, 0), (0, 0), (0, K_eff - K), (0, K_eff - K)))
    Wr = Wc.reshape(Cin, Cout, Kq, s, Kq, s)[:, :, ::-1, :, ::-1, :]
    Wmat = Wr.transpose(3, 5, 1, 2, 4, 0).reshape(s * s * Cout, Kq * Kq * Cin)

    # --- compact, zero-free im2col of the ORIGINAL x (bf16), channels-major,
    #     batch folded into the lane axis: xcol (CKK, N*Jh*Jw) ---
    Kq1 = Kq - 1
    Jh, Jw = H + Kq1, Wi + Kq1
    xt = jnp.transpose(x.astype(compute_dtype), (1, 0, 2, 3))      # (Cin, N, H, W)
    xpad = jnp.pad(xt, ((0, 0), (0, 0), (Kq1, Kq1), (Kq1, Kq1)))
    NS = N * Jh * Jw
    cols = [xpad[:, :, a:a + Jh, b:b + Jw].reshape(Cin, NS)
            for a in range(Kq) for b in range(Kq)]
    xcol = jnp.concatenate(cols, axis=0)                           # (CKK, N*NS)

    M = s * s * Cout
    CKK = Kq * Kq * Cin

    in_item = jnp.dtype(compute_dtype).itemsize
    out_dtype = compute_dtype             # bf16 writeback; f32 acc stays in VMEM
    out_item = jnp.dtype(out_dtype).itemsize
    vmem_cap = _vmem_capacity_bytes()

    # --- tiling: lane-dense spatial tiles (batch already folded), M tiled,
    #     reduction tile = full CKK when it fits (weights fetched once / M row) ---
    if NS <= 1024:
        n_tile = _round_up(NS, 128)
    else:
        n_tile = 1024 if vmem_cap >= (96 << 20) else 512           # v5e/v6e vs v7x
    NSp = _round_up(NS, n_tile)

    Mp = _round_up(M, 8)
    if Mp > 512:
        tm = 256                          # full 256-wide MXU rows (v6e/v7x)
        Mp = _round_up(M, tm)
    else:
        tm = Mp

    budget = max(vmem_cap - (16 << 20), 24 << 20)   # leave pipeline headroom

    def vmem_need(kt):
        w_blk = tm * kt * in_item
        x_blk = kt * n_tile * in_item
        o_blk = tm * n_tile * out_item
        # double-buffered in/out blocks + single f32 accumulator + slack
        return 2 * (w_blk + x_blk + o_blk) + tm * n_tile * 4 + (2 << 20)

    k_full = _round_up(CKK, 8)
    k_tile = 128
    for kt in [k_full] + [k for k in (4096, 2048, 1024, 512, 256, 128) if k < k_full]:
        if vmem_need(kt) <= budget:
            k_tile = kt
            break
    CKKp = k_full if k_tile == k_full else _round_up(CKK, k_tile)

    # --- single fused zero-pad of both matmul operands (padded rows/cols -> 0) ---
    if (Mp, CKKp) != (M, CKK):
        Wmat = jnp.pad(Wmat, ((0, Mp - M), (0, CKKp - CKK)))
    if (CKKp, NSp) != (CKK, NS):
        xcol = jnp.pad(xcol, ((0, CKKp - CKK), (0, NSp - NS)))

    need = vmem_need(k_tile)
    vmem_limit = int(min(max(need + (4 << 20), 32 << 20),
                         max(vmem_cap - (8 << 20), 32 << 20)))

    grid = (Mp // tm, NSp // n_tile, CKKp // k_tile)

    Y = pl.pallas_call(
        _convt_matmul_kernel,
        out_shape=jax.ShapeDtypeStruct((Mp, NSp), out_dtype),
        grid_spec=pltpu.PrefetchScalarGridSpec(
            num_scalar_prefetch=0,
            grid=grid,
            in_specs=[
                # weight block varies only with (m, k): constant across spatial tiles
                pl.BlockSpec((tm, k_tile), lambda m, t, k: (m, k)),
                pl.BlockSpec((k_tile, n_tile), lambda m, t, k: (k, t)),
            ],
            out_specs=pl.BlockSpec((tm, n_tile), lambda m, t, k: (m, t)),
            scratch_shapes=[pltpu.VMEM((tm, n_tile), jnp.float32)],
        ),
        compiler_params=pltpu.CompilerParams(
            dimension_semantics=("parallel", "parallel", "arbitrary"),
            vmem_limit_bytes=vmem_limit,
        ),
        cost_estimate=pl.CostEstimate(
            flops=2 * Mp * CKKp * NSp,
            transcendentals=0,
            bytes_accessed=(CKKp * NSp * in_item
                            + Mp * CKKp * in_item
                            + Mp * NSp * out_item),
        ),
    )(Wmat, xcol)

    # --- interleave the s*s phases back to NCHW, crop conv-transpose padding ---
    full = (Y[:M, :NS]
            .reshape(s, s, Cout, N, Jh, Jw)
            .transpose(3, 2, 4, 0, 5, 1)
            .reshape(N, Cout, Jh * s, Jw * s))
    return full[:, :, p:p + OH, p:p + OW].astype(jnp.float32)


def convt_ref(x, W, stride, padding):
    """Independent pure-JAX scatter-add reference for ConvTranspose2d."""
    N, Cin, H, Wi = x.shape
    _, Cout, K, _ = W.shape
    OH = (H - 1) * stride - 2 * padding + K
    OW = (Wi - 1) * stride - 2 * padding + K
    full = jnp.zeros((N, Cout, (H - 1) * stride + K, (Wi - 1) * stride + K),
                     jnp.float32)
    contrib = jnp.einsum("nchw,cokl->nohwkl", x, W)
    for kh in range(K):
        for kw in range(K):
            full = full.at[:, :, kh:kh + (H - 1) * stride + 1:stride,
                           kw:kw + (Wi - 1) * stride + 1:stride].add(
                               contrib[:, :, :, :, kh, kw])
    return full[:, :, padding:padding + OH, padding:padding + OW]


class CnvTranspose2dSeparablePallas:
    """Pallas port of CnvTranspose2d_separable (bias=False), branches fused."""

    def __init__(self, key, n_input_ch, n_output_ch, kernel_size, stride, padding,
                 red_portion=0.5, compute_dtype=jnp.bfloat16):
        self.n_input_ch = n_input_ch
        self.n_input_ch_red = int(n_input_ch * red_portion)
        self.n_output_ch_red = int(n_output_ch * red_portion)
        self.n_output_ch_green = n_output_ch - self.n_output_ch_red
        self.kernel_size = kernel_size
        self.stride = stride
        self.padding = padding
        self.compute_dtype = compute_dtype
        k1, k2 = jax.random.split(key)
        # PyTorch ConvTranspose2d weight layout: (Cin, Cout, K, K)
        self.w_half = 0.1 * jax.random.normal(
            k1, (self.n_input_ch_red, self.n_output_ch_red, kernel_size, kernel_size),
            dtype=jnp.float32)
        self.w_all = 0.1 * jax.random.normal(
            k2, (self.n_input_ch, self.n_output_ch_green, kernel_size, kernel_size),
            dtype=jnp.float32)

    def __call__(self, x):
        # Fuse both branches: the "half" branch only reads the red input
        # channels, so zero-pad its weights over the green channels and stack
        # with the "all" branch along Cout -> one im2col + one matmul.
        Cin, K = self.n_input_ch, self.kernel_size
        w_half_full = jnp.zeros((Cin, self.n_output_ch_red, K, K),
                                self.w_half.dtype).at[:self.n_input_ch_red].set(self.w_half)
        w_comb = jnp.concatenate([w_half_full, self.w_all], axis=1)
        return conv_transpose2d_pallas(x, w_comb, self.stride, self.padding,
                                       self.compute_dtype)

    def reference(self, x):
        first_half = x[:, :self.n_input_ch_red, :, :]
        return jnp.concatenate(
            (convt_ref(first_half, self.w_half, self.stride, self.padding),
             convt_ref(x, self.w_all, self.stride, self.padding)), axis=1)


if __name__ == "__main__":
    key = jax.random.PRNGKey(0)
    kx, kp, kx2, kp2 = jax.random.split(key, 4)

    # --- Config 1: DCGAN-style separable up-conv (kernel=4, stride=2, padding=1) ---
    N, Cin, H, W = 2, 4, 16, 16
    Cout = 8
    x = jax.random.normal(kx, (N, Cin, H, W), dtype=jnp.float32)
    mod = CnvTranspose2dSeparablePallas(kp, n_input_ch=Cin, n_output_ch=Cout,
                                        kernel_size=4, stride=2, padding=1,
                                        red_portion=0.5)
    fwd = jax.jit(mod.__call__)          # whole forward (cast/im2col/kernel/interleave) under one jit
    out = jax.block_until_ready(fwd(x))
    OH = (H - 1) * 2 - 2 + 4
    assert out.shape == (N, Cout, OH, OH), out.shape
    ref = jax.block_until_ready(mod.reference(x))
    # bf16 matmul inputs/output with f32 accumulation -> loosened tolerance.
    err = float(jnp.max(jnp.abs(out - ref)))
    assert jnp.allclose(out, ref, atol=3e-2, rtol=3e-2), err

    # --- Config 2: kernel not divisible by stride, padding=0 (generality check) ---
    x2 = jax.random.normal(kx2, (1, 6, 7, 7), dtype=jnp.float32)
    mod2 = CnvTranspose2dSeparablePallas(kp2, n_input_ch=6, n_output_ch=6,
                                         kernel_size=3, stride=2, padding=0,
                                         red_portion=0.5)
    out2 = jax.block_until_ready(jax.jit(mod2.__call__)(x2))
    assert out2.shape == (1, 6, 15, 15), out2.shape
    ref2 = jax.block_until_ready(mod2.reference(x2))
    err2 = float(jnp.max(jnp.abs(out2 - ref2)))
    assert jnp.allclose(out2, ref2, atol=3e-2, rtol=3e-2), err2

    print("KERNEL_OK")
</pallas_src>

<mosaic_0001>
module attributes {stable_mosaic.version = 11 : i64} {
  func.func @_convt_matmul_kernel(%arg0: i32, %arg1: i32, %arg2: i32, %arg3: memref<32x16xbf16, #tpu.memory_space<vmem>>, %arg4: memref<16x640xbf16, #tpu.memory_space<vmem>>, %arg5: memref<32x640xbf16, #tpu.memory_space<vmem>>, %arg6: memref<32x640xf32, #tpu.memory_space<vmem>>) attributes {dimension_semantics = [#tpu.dimension_semantics<parallel>, #tpu.dimension_semantics<parallel>, #tpu.dimension_semantics<arbitrary>], iteration_bounds = array<i64: 1, 1, 1>, scalar_prefetch = 0 : i64, scratch_operands = 1 : i64, tpu.core_type = #tpu.core_type<tc>, window_params = [{transform_indices = @transform_0, window_bounds = array<i64: 32, 16>}, {transform_indices = @transform_1, window_bounds = array<i64: 16, 640>}, {transform_indices = @transform_2, window_bounds = array<i64: 32, 640>}]} {
    %c0_i32 = arith.constant 0 : i32
    %0 = arith.cmpi eq, %arg2, %c0_i32 : i32
    %1 = arith.extui %0 : i1 to i32
    %c0_i32_0 = arith.constant 0 : i32
    %2 = arith.cmpi ne, %1, %c0_i32_0 : i32
    scf.if %2 {
      %cst_10 = arith.constant 0.000000e+00 : f32
      %12 = vector.broadcast %cst_10 : f32 to vector<32x640xf32>
      %c0_11 = arith.constant 0 : index
      %c0_12 = arith.constant 0 : index
      %13 = vector.load %arg6[%c0_11, %c0_12] : memref<32x640xf32, #tpu.memory_space<vmem>>, vector<32x640xf32>
      tpu.vector_store %arg6[%c0_11, %c0_12], %12 {strides = array<i32>} : memref<32x640xf32, #tpu.memory_space<vmem>>, vector<32x640xf32>,
    } else {
    }
    %c0 = arith.constant 0 : index
    %c0_1 = arith.constant 0 : index
    %3 = vector.load %arg6[%c0, %c0_1] : memref<32x640xf32, #tpu.memory_space<vmem>>, vector<32x640xf32>
    %c0_2 = arith.constant 0 : index
    %c0_3 = arith.constant 0 : index
    %4 = vector.load %arg3[%c0_2, %c0_3] : memref<32x16xbf16, #tpu.memory_space<vmem>>, vector<32x16xbf16>
    %c0_4 = arith.constant 0 : index
    %c0_5 = arith.constant 0 : index
    %5 = vector.load %arg4[%c0_4, %c0_5] : memref<16x640xbf16, #tpu.memory_space<vmem>>, vector<16x640xbf16>
    %cst = arith.constant dense<0.000000e+00> : vector<32x640xf32>
    %6 = tpu.matmul %4, %5, %cst {dimension_numbers = #tpu.dot_dimension_numbers<[1], [0], [0], [1], [0, 0, 1, 1], [], []>} : vector<32x16xbf16>, vector<16x640xbf16>, vector<32x640xf32> -> vector<32x640xf32>
    %7 = arith.addf %3, %6 : vector<32x640xf32>
    %c0_6 = arith.constant 0 : index
    %c0_7 = arith.constant 0 : index
    %8 = vector.load %arg6[%c0_6, %c0_7] : memref<32x640xf32, #tpu.memory_space<vmem>>, vector<32x640xf32>
    tpu.vector_store %arg6[%c0_6, %c0_7], %7 {strides = array<i32>} : memref<32x640xf32, #tpu.memory_space<vmem>>, vector<32x640xf32>,
    %c0_i32_8 = arith.constant 0 : i32
    %9 = arith.cmpi eq, %arg2, %c0_i32_8 : i32
    %10 = arith.extui %9 : i1 to i32
    %c0_i32_9 = arith.constant 0 : i32
    %11 = arith.cmpi ne, %10, %c0_i32_9 : i32
    scf.if %11 {
      %c0_10 = arith.constant 0 : index
      %c0_11 = arith.constant 0 : index
      %12 = vector.load %arg6[%c0_10, %c0_11] : memref<32x640xf32, #tpu.memory_space<vmem>>, vector<32x640xf32>
      %13 = arith.truncf %12 : vector<32x640xf32> to vector<32x640xbf16>
      %c0_12 = arith.constant 0 : index
      %c0_13 = arith.constant 0 : index
      %14 = vector.load %arg5[%c0_12, %c0_13] : memref<32x640xbf16, #tpu.memory_space<vmem>>, vector<32x640xbf16>
      tpu.vector_store %arg5[%c0_12, %c0_13], %13 {strides = array<i32>} : memref<32x640xbf16, #tpu.memory_space<vmem>>, vector<32x640xbf16>,
    } else {
    }
    return
  }
  func.func @transform_0(%arg0: i32, %arg1: i32, %arg2: i32) -> (i32, i32) {
    %c0_i32 = arith.constant 0 : i32
    return %arg0, %arg2 : i32, i32
  }
  func.func @transform_1(%arg0: i32, %arg1: i32, %arg2: i32) -> (i32, i32) {
    %c0_i32 = arith.constant 0 : i32
    return %arg2, %arg1 : i32, i32
  }
  func.func @transform_2(%arg0: i32, %arg1: i32, %arg2: i32) -> (i32, i32) {
    %c0_i32 = arith.constant 0 : i32
    return %arg0, %arg1 : i32, i32
  }
}

</mosaic_0001>

<bundles_post_ra>
// kernel: a_call__.1
= control target key start
LH: loop header
LB: loop body
LE: loop exit
PB: predicated region body
PF: predicated region fallthrough
CT: control target
= control target key end

     0   :  { %vm102_vm0 = vcmask 130048   ;;  %s438_s1 = inlined_call_operand.vmem [shape: bf16[16,640], index: 1, kind: input, shape index: {}]   ;;  %s439_s0 = inlined_call_operand.vmem [shape: bf16[32,16], index: 0, kind: input, shape index: {}]   ;;  %s440_s2 = inlined_call_operand.vmem [shape: bf16[32,640], index: 2, kind: output, shape index: {}]  }
   0x1   :  { %v305_v0 = vld [vmem:[%s438_s1] sm:$0xf]  ;;  %v337_v1 = vld [vmem:[%s438_s1 + $0x10] sm:$0xf0]  ;;  %v313_v2 = vld [vmem:[%s438_s1 + $0x8] sm:$0xf] }
   0x2   :  { %v306_v3 = vor.u32 %v337_v1, %v305_v0  ;;  %v338_v4 = vld [vmem:[%s438_s1 + $0x18] sm:$0xf0]  ;;  %v336_v5 = vld [vmem:[%s438_s1 + $0xc] sm:$0xf]  ;;  %v315_v6 = vld [vmem:[%s438_s1 + $0x1c] sm:$0xf0] }
   0x3   :  { %v314_v7 = vor.u32 %v338_v4, %v313_v2  ;;  %v318_v8 = vor.u32 %v336_v5, %v315_v6  ;;  %v333_v9 = vld [vmem:[%s439_s0] sm:$0xff]  ;;  %v334_v10 = vld [vmem:[%s439_s0 + $0x8] sm:$0xff]  ;;  %v307_v12 = vld [vmem:[%s438_s1 + $0x14] sm:$0xf0] }
   0x4   :  { %v335_v11 = vld [vmem:[%s438_s1 + $0x4] sm:$0xf]  ;;  %116 = vmatpush.bf16.msra.mxu0 %v306_v3  ;;  %340 = vmatpush.bf16.msra.mxu1 %v306_v3  ;;  %v321_v13 = vld [vmem:[%s438_s1 + $0x10] sm:$0xf] }
   0x5   :  { %v339_v14 = vld [vmem:[%s438_s1 + $0x20] sm:$0xf0]  ;;  %154 = vmatpush.bf16.msra.mxu2 %v314_v7  ;;  %173 = vmatpush.bf16.msra.mxu3 %v318_v8  ;;  %v310_v15 = vor.u32 %v335_v11, %v307_v12 }
   0x6   :  { %v322_v16 = vor.u32 %v339_v14, %v321_v13 }
   0x7   :  { %323 = vmatmul.msk.bf16.vlgmr.msra.gmra.mxu0 %vm102_vm0, %v333_v9  ;;  %324 = vmatmul.msk.bf16.vlgmr.msra.gmra.mxu1 %vm102_vm0, %v334_v10 }
   0x8   :  { %135 = vmatpush.bf16.msrb.mxu1 %v310_v15  ;;  %192 = vmatpush.bf16.msrb.mxu0 %v322_v16 }
   0x9   :  { %327 = vmatmul.msk.bf16.vlgmr.msra.gmra.mxu2 %vm102_vm0, %v333_v9  ;;  %329 = vmatmul.msk.bf16.vlgmr.msra.gmra.mxu3 %vm102_vm0, %v333_v9 }
  0x17   :  { %325 = vmatmul.msk.bf16.vlgmr.msrb.gmra.mxu1 %vm102_vm0, %v333_v9  ;;  %331 = vmatmul.msk.bf16.vlgmr.msrb.gmra.mxu0 %vm102_vm0, %v333_v9 }
  0x19   :  { %328 = vmatmul.msk.bf16.gmra.mxu2 %vm102_vm0, %v334_v10  ;;  %330 = vmatmul.msk.bf16.gmra.mxu3 %vm102_vm0, %v334_v10 }
  0x27   :  { %326 = vmatmul.msk.bf16.gmra.mxu1 %vm102_vm0, %v334_v10  ;;  %332 = vmatmul.msk.bf16.gmra.mxu0 %vm102_vm0, %v334_v10 }
  0x84   :  { %v118_v17 = vpop.f32.mrf.mxu0  ;;  %v123_v18 = vpop.f32.mrf.mxu1 }
  0x8c   :  { %v120_v19 = vpop.f32.mrf.mxu0  ;;  %v125_v20 = vpop.f32.mrf.mxu1 }
  0x8d   :  { %v156_v21 = vpop.f32.mrf.mxu2  ;;  %v175_v22 = vpop.f32.mrf.mxu3 }
  0x8e   :  { %v268_v23 = vpack.c.bf16 %v175_v22, %v156_v21 }
  0x90   :  { %280 = vst [vmem:[%s440_s2 + $0x8] sm:$0xff] %v268_v23 }
  0x94   :  { %v137_v24 = vpop.f32.mrf.mxu1  ;;  %v194_v25 = vpop.f32.mrf.mxu0 }
  0x95   :  { %v267_v26 = vpack.c.bf16 %v137_v24, %v118_v17  ;;  %v158_v27 = vpop.f32.mrf.mxu2  ;;  %v177_v28 = vpop.f32.mrf.mxu3  ;;  %v269_v29 = vpack.c.bf16 %v194_v25, %v194_v25 }
  0x96   :  { %v271_v30 = vpack.c.bf16 %v177_v28, %v158_v27 }
  0x97   :  { %279 = vst [vmem:[%s440_s2] sm:$0xff] %v267_v26 }
  0x98   :  { %283 = vst [vmem:[%s440_s2 + $0x1c] sm:$0xff] %v271_v30 }
  0x99   :  { %281 = vst [vmem:[%s440_s2 + $0x10] sm:$0xf] %v269_v29 }
  0x9c   :  { %v139_v31 = vpop.f32.mrf.mxu1  ;;  %v196_v32 = vpop.f32.mrf.mxu0 }
  0x9d   :  { %v270_v33 = vpack.c.bf16 %v139_v31, %v120_v19  ;;  %v161_v34 = vpop.f32.mrf.mxu2  ;;  %v180_v35 = vpop.f32.mrf.mxu3  ;;  %v272_v36 = vpack.c.bf16 %v196_v32, %v196_v32 }
  0x9e   :  { %v274_v37 = vpack.c.bf16 %v180_v35, %v161_v34 }
  0x9f   :  { %282 = vst [vmem:[%s440_s2 + $0x14] sm:$0xff] %v270_v33 }
  0xa0   :  { %286 = vst [vmem:[%s440_s2 + $0x30] sm:$0xff] %v274_v37 }
  0xa1   :  { %284 = vst [vmem:[%s440_s2 + $0x24] sm:$0xf] %v272_v36 }
  0xa4   :  { %v142_v38 = vpop.f32.mrf.mxu1  ;;  %v199_v39 = vpop.f32.mrf.mxu0 }
  0xa5   :  { %v273_v40 = vpack.c.bf16 %v142_v38, %v123_v18  ;;  %v163_v41 = vpop.f32.mrf.mxu2  ;;  %v182_v42 = vpop.f32.mrf.mxu3  ;;  %v275_v43 = vpack.c.bf16 %v199_v39, %v199_v39 }
  0xa6   :  { %v277_v44 = vpack.c.bf16 %v182_v42, %v163_v41 }
  0xa7   :  { %285 = vst [vmem:[%s440_s2 + $0x28] sm:$0xff] %v273_v40 }
  0xa8   :  { %289 = vst [vmem:[%s440_s2 + $0x44] sm:$0xff] %v277_v44 }
  0xa9   :  { %287 = vst [vmem:[%s440_s2 + $0x38] sm:$0xf] %v275_v43 }
  0xac   :  { %v144_v45 = vpop.f32.mrf.mxu1  ;;  %v201_v46 = vpop.f32.mrf.mxu0 }
  0xad   :  { %v276_v47 = vpack.c.bf16 %v144_v45, %v125_v20  ;;  %v278_v48 = vpack.c.bf16 %v201_v46, %v201_v46 }
  0xaf   :  { %288 = vst [vmem:[%s440_s2 + $0x3c] sm:$0xff] %v276_v47 }
  0xb0   :  { %290 = vst [vmem:[%s440_s2 + $0x4c] sm:$0xf] %v278_v48 }

</bundles_post_ra>
